<compile_context>
chip_gen: v6e
topology: v6e:2x2x1
jax: 0.10.0
libtpu: 0.0.40
codegen_flags: <defaults>
</compile_context>

<pallas_src>
import jax
import jax.numpy as jnp
from jax import lax
from jax.experimental import pallas as pl
from jax.experimental.pallas import tpu as pltpu


def _normalize_kernel(x_ref, o_ref, *, p):
    # x_ref / o_ref: (TN, C, TS) VMEM tiles; reduce over axis 1 (channels).
    x = x_ref[...]
    if p == 2:
        if x.dtype == jnp.float16:
            # fp16 squares overflow for |x| > ~256: upcast before squaring and
            # keep the scale multiply in f32 as well.
            xf = x.astype(jnp.float32)
            s = jnp.sum(xf * xf, axis=1, keepdims=True)
            inv = lax.rsqrt(s)  # zero-norm pixel -> inf -> NaN (matches torch, no eps)
            o_ref[...] = (xf * inv).astype(o_ref.dtype)
        else:
            # Square on the VPU in native dtype, accumulate directly in f32
            # (no full-tile f32 temporary), one rsqrt per pixel, broadcast mul.
            s = jnp.sum(x * x, axis=1, keepdims=True, dtype=jnp.float32)
            inv = lax.rsqrt(s)  # zero-norm pixel -> inf -> NaN (matches torch, no eps)
            o_ref[...] = (x * inv.astype(x.dtype)).astype(o_ref.dtype)
    else:
        # Generic fallback (matches torch x.pow(p).sum(1).pow(1/p) semantics,
        # incl. NaN on negative inputs with non-integer p).  Per-pixel scale
        # s**(-1/p) + broadcast multiply: one transcendental per pixel instead
        # of a divide per element.
        xf = x.astype(jnp.float32)
        s = jnp.sum(xf ** p, axis=1, keepdims=True)
        scale = s ** (-1.0 / p)
        o_ref[...] = (xf * scale).astype(o_ref.dtype)


def _round_up(v, m):
    return -(-v // m) * m


def _tpu_tiling_config():
    """Return (vmem_limit_bytes, block_budget_bytes, min_grid_steps).

    Streaming kernel: VMEM footprint ~= 4 x block (input + output, each
    double-buffered) plus compiler scratch, so 4 * block_budget is kept well
    under vmem_limit_bytes, and vmem_limit_bytes under the physical VMEM.
    """
    vmem_cap = None
    kind = ""
    try:
        vmem_cap = int(pltpu.get_tpu_info().vmem_capacity_bytes)
    except Exception:
        vmem_cap = None
    try:
        kind = jax.devices()[0].device_kind.lower()
    except Exception:
        kind = ""
    if vmem_cap is None:
        vmem_cap = 128 << 20  # v5e/v6e-style default

    if (vmem_cap <= (64 << 20)) or ("v7" in kind):
        # v7x-class: 64 MiB VMEM per TensorCore, 2 TCs/chip, 3.2 TB/s HBM.
        vmem_limit = max(32 << 20, min(vmem_cap - (16 << 20), 48 << 20))
        block_budget = 8 << 20
        multicore = True
    elif ("v5" in kind) and ("v5p" not in kind):
        # v5e: 128 MiB VMEM, single TC, ~0.8 TB/s HBM -> 8 MiB blocks are
        # already on the roofline plateau; explicit limit keeps 2-deep
        # pipelining alive (scoped default is only 16 MiB).
        vmem_limit = 48 << 20
        block_budget = 8 << 20
        multicore = False
    else:
        # v6e-class (or unknown 128 MiB part): bigger blocks, 64 MiB cap.
        vmem_limit = 64 << 20
        block_budget = 12 << 20
        multicore = ("v4" in kind) or ("v5p" in kind)

    block_budget = min(block_budget, vmem_limit // 4)
    min_steps = 2 if multicore else 1
    return vmem_limit, block_budget, min_steps


def _choose_tiles(N, C, HW, itemsize, block_budget, min_steps):
    """Pick (tn, ts): batch tile and flattened-spatial (lane-axis) tile."""
    per_image = C * HW * itemsize
    if per_image <= block_budget:
        # Full spatial extent per block; pack as many images as fit the budget.
        ts = HW
        tn = max(1, min(N, block_budget // max(per_image, 1)))
    else:
        # A single image exceeds the budget: tile the flattened spatial axis in
        # 128-lane multiples.  Ragged last block is handled by the cdiv grid
        # (reduction is per-pixel, so padded lanes cannot contaminate outputs).
        tn = 1
        ts = (block_budget // max(C * itemsize, 1)) // 128 * 128
        ts = max(128, min(ts, _round_up(HW, 128)))
        if ts >= HW:
            ts = HW

    # Guarantee >= min_steps grid steps so multi-TensorCore chips (v7x) shard
    # the ("parallel","parallel") grid across cores.  On single-core chips
    # min_steps == 1: keep the fewest, biggest blocks (no extra per-step cost).
    def n_steps(tn_, ts_):
        return pl.cdiv(N, tn_) * pl.cdiv(HW, ts_)

    while n_steps(tn, ts) < min_steps:
        if tn > 1:
            tn = -(-tn // 2)
        else:
            new_ts = _round_up(-(-ts // 2), 128)
            if new_ts >= ts:
                break  # cannot split further (HW <= 128)
            ts = new_ts
    return tn, ts


def normalize(x, p=2):
    """Lp-normalize x (NCHW) over the channel dimension, matching
    torch: x / x.pow(p).sum(1, keepdim=True).pow(1/p)."""
    N, C, H, W = x.shape
    HW = H * W
    # Lane-dense layout: flattened spatial axis (H*W) maps to the 128-wide lane
    # dimension.  NOTE: for stages with H*W < 128 (e.g. WRN's 8x8 maps) stores
    # become masked vst.msk into half-empty vregs; packing 128//HW images onto
    # the lane axis would fix that but needs an NCHW transpose that only pays
    # off if fused into the producer/consumer -- as a standalone op the extra
    # HBM round-trip would cost more than the masked stores, so we accept it.
    xr = x.reshape(N, C, HW)

    vmem_limit, block_budget, min_steps = _tpu_tiling_config()
    tn, ts = _choose_tiles(N, C, HW, jnp.dtype(x.dtype).itemsize,
                           block_budget, min_steps)
    grid = (pl.cdiv(N, tn), pl.cdiv(HW, ts))

    kernel = lambda x_ref, o_ref: _normalize_kernel(x_ref, o_ref, p=p)

    out = pl.pallas_call(
        kernel,
        out_shape=jax.ShapeDtypeStruct((N, C, HW), x.dtype),
        grid_spec=pl.GridSpec(
            grid=grid,
            in_specs=[pl.BlockSpec((tn, C, ts), lambda n, s: (n, 0, s))],
            out_specs=pl.BlockSpec((tn, C, ts), lambda n, s: (n, 0, s)),
        ),
        compiler_params=pltpu.CompilerParams(
            dimension_semantics=("parallel", "parallel"),
            vmem_limit_bytes=vmem_limit,
        ),
    )(xr)

    return out.reshape(N, C, H, W)


if __name__ == "__main__":
    key = jax.random.PRNGKey(0)
    # Small NCHW conv-style input consistent with WRN feature maps.
    x = jax.random.normal(key, (2, 4, 16, 16), dtype=jnp.float32)

    out = jax.block_until_ready(normalize(x, p=2))

    # Pure-JAX reference (same math as the PyTorch forward).
    norm_ref = jnp.power(jnp.sum(jnp.power(x, 2), axis=1, keepdims=True), 0.5)
    ref = x / norm_ref
    assert out.shape == x.shape and out.dtype == x.dtype
    assert jnp.allclose(out, ref, atol=1e-5, rtol=1e-5)

    print("KERNEL_OK")
</pallas_src>

<mosaic_0001>
module attributes {stable_mosaic.version = 11 : i64} {
  func.func @_lambda_(%arg0: i32, %arg1: i32, %arg2: memref<2x4x256xf32, #tpu.memory_space<vmem>>, %arg3: memref<2x4x256xf32, #tpu.memory_space<vmem>>) attributes {dimension_semantics = [#tpu.dimension_semantics<parallel>, #tpu.dimension_semantics<parallel>], iteration_bounds = array<i64: 1, 1>, scalar_prefetch = 0 : i64, scratch_operands = 0 : i64, tpu.core_type = #tpu.core_type<tc>, window_params = [{transform_indices = @transform_0, window_bounds = array<i64: 2, 4, 256>}, {transform_indices = @transform_1, window_bounds = array<i64: 2, 4, 256>}]} {
    %c0 = arith.constant 0 : index
    %c0_0 = arith.constant 0 : index
    %c0_1 = arith.constant 0 : index
    %0 = vector.load %arg2[%c0, %c0_0, %c0_1] : memref<2x4x256xf32, #tpu.memory_space<vmem>>, vector<2x4x256xf32>
    %1 = arith.mulf %0, %0 : vector<2x4x256xf32>
    %cst = arith.constant dense<0.000000e+00> : vector<2x256xf32>
    %2 = vector.multi_reduction <add>, %1, %cst [1] : vector<2x4x256xf32> to vector<2x256xf32>
    %3 = vector.shape_cast %2 : vector<2x256xf32> to vector<2x1x256xf32>
    %4 = math.rsqrt %3 : vector<2x1x256xf32>
    %5 = vector.broadcast %4 : vector<2x1x256xf32> to vector<2x4x256xf32>
    %6 = arith.mulf %0, %5 : vector<2x4x256xf32>
    %c0_2 = arith.constant 0 : index
    %c0_3 = arith.constant 0 : index
    %c0_4 = arith.constant 0 : index
    %7 = vector.load %arg3[%c0_2, %c0_3, %c0_4] : memref<2x4x256xf32, #tpu.memory_space<vmem>>, vector<2x4x256xf32>
    tpu.vector_store %arg3[%c0_2, %c0_3, %c0_4], %6 {strides = array<i32>} : memref<2x4x256xf32, #tpu.memory_space<vmem>>, vector<2x4x256xf32>,
    return
  }
  func.func @transform_0(%arg0: i32, %arg1: i32) -> (i32, i32, i32) {
    %c0_i32 = arith.constant 0 : i32
    %c0_i32_0 = arith.constant 0 : i32
    return %arg0, %c0_i32, %arg1 : i32, i32, i32
  }
  func.func @transform_1(%arg0: i32, %arg1: i32) -> (i32, i32, i32) {
    %c0_i32 = arith.constant 0 : i32
    %c0_i32_0 = arith.constant 0 : i32
    return %arg0, %c0_i32, %arg1 : i32, i32, i32
  }
}

</mosaic_0001>

<bundles_post_ra>
// kernel: tpu_custom_call.1
= control target key start
LH: loop header
LB: loop body
LE: loop exit
PB: predicated region body
PF: predicated region fallthrough
CT: control target
= control target key end

     0   :  { %6 = vsyncpa [#allocation3], 0  ;;  %s177_s0 = inlined_call_operand.hbm [shape: f32[2,4,256], index: 0, kind: input, shape index: {}]   ;;  %s178_s1 = inlined_call_operand.hbm [shape: f32[2,4,256], index: 1, kind: output, shape index: {}]  }
   0x1   :  { %7 = vsyncpa [#allocation4], 0  ;;  %s151_s6 = smov [#allocation2]  }
   0x2   :  { %s13_s7 = sshll.u32 %s151_s6, 4  ;;  %s14_s7 = int_to_ptr.vmem [resolvable:$true] %s13_s7 }
   0x3   :  { %s115_s8 = scalar_lea.vmem %s14_s7, 256  ;;  %p120_p1 = scmp.lt.s32.totalorder %s14_s7, %s14_s7 }
   0x4   :  { %p116_p0 = scmp.ne.s32.totalorder %s14_s7, %s115_s8  ;;  %p121_p2 = scmp.lt.s32.totalorder %s115_s8, %s115_s8 }
   0x6   :  { %p122_p3 = por %p121_p2, %p120_p1 }
   0x8   :  { %p123_p4 = pnand %p122_p3, %p116_p0 }
   0xa   :  { %126 = shalt.err (!%p123_p4)
}
   0xb   :  { %s152_s9 = smov 128   ;;  %s153_s10 = smov 8  }
   0xc   :  { %19 = dma.hbm_to_vmem [thread:$0]  %s177_s0, 256, %s14_s7, [#allocation3], %s152_s9, %s152_s9, %s153_s10  }
   0xd   :  { %147 = dma.done.wait [#allocation3], 256  }
   0xe   :  { %148 = vsyncadd [#allocation3], 4294967040  ;;  %v23_v0 = vld [vmem:[#allocation2] sm:$0xff]  ;;  %vm33_vm0 = vcmask 1043456   ;;  %v24_v1 = vld [vmem:[#allocation2 + $0x8] sm:$0xff]  ;;  %s154_s0 = smov [#allocation5]  }
   0xf   :  { %v25_v2 = vmul.f32 %v23_v0, %v23_v0  ;;  %v26_v3 = vmul.f32 %v24_v1, %v24_v1  ;;  %s83_s13 = sshll.u32 %s154_s0, 4  ;;  %s84_s13 = int_to_ptr.vmem [resolvable:$true] %s83_s13 }
  0x10   :  { %s127_s14 = scalar_lea.vmem %s84_s13, 256  ;;  %p132_p6 = scmp.lt.s32.totalorder %s84_s13, %s84_s13 }
  0x11   :  { %v29_v4 = vcombine.high %v25_v2, %v25_v2  ;;  %v34_v5 = vsel %vm33_vm0, %v25_v2, 0.0  ;;  %v30_v6 = vcombine.high %v26_v3, %v26_v3  ;;  %v48_v7 = vsel %vm33_vm0, %v26_v3, 0.0  ;;  %p128_p5 = scmp.ne.s32.totalorder %s84_s13, %s127_s14  ;;  %p133_p7 = scmp.lt.s32.totalorder %s127_s14, %s127_s14 }
  0x12   :  { %v35_v8 = vrot.slane %v34_v5, 4  ;;  %v49_v9 = vrot.slane %v48_v7, 4 }
  0x13   :  { %v41_v10 = vsel %vm33_vm0, %v29_v4, 0.0  ;;  %v55_v11 = vsel %vm33_vm0, %v30_v6, 0.0  ;;  %p134_p8 = por %p133_p7, %p132_p6 }
  0x14   :  { %v36_v12 = vadd.f32 %v35_v8, %v34_v5  ;;  %v42_v13 = vrot.slane %v41_v10, 4  ;;  %v50_v14 = vadd.f32 %v49_v9, %v48_v7  ;;  %v56_v15 = vrot.slane %v55_v11, 4 }
  0x15   :  { %p135_p9 = pnand %p134_p8, %p128_p5 }
  0x16   :  { %v37_v16 = vrot.slane %v36_v12, 2  ;;  %v43_v17 = vadd.f32 %v42_v13, %v41_v10  ;;  %v51_v18 = vrot.slane %v50_v14, 2  ;;  %v57_v19 = vadd.f32 %v56_v15, %v55_v11 }
  0x18   :  { %v38_v20 = vadd.f32 %v37_v16, %v36_v12  ;;  %v44_v21 = vrot.slane %v43_v17, 2  ;;  %v52_v22 = vadd.f32 %v51_v18, %v50_v14  ;;  %v58_v23 = vrot.slane %v57_v19, 2 }
  0x1a   :  { %v39_v24 = vrot.slane %v38_v20, 1  ;;  %v45_v25 = vadd.f32 %v44_v21, %v43_v17  ;;  %v53_v26 = vrot.slane %v52_v22, 1  ;;  %v59_v27 = vadd.f32 %v58_v23, %v57_v19 }
  0x1c   :  { %v40_v28 = vadd.f32 %v39_v24, %v38_v20  ;;  %v46_v29 = vrot.slane %v45_v25, 1  ;;  %v54_v30 = vadd.f32 %v53_v26, %v52_v22  ;;  %v60_v31 = vrot.slane %v59_v27, 1 }
  0x1e   :  { %v47_v32 = vadd.f32 %v46_v29, %v45_v25  ;;  %99 = vrsqrt.f32 %v40_v28  ;;  %v61_v33 = vadd.f32 %v60_v31, %v59_v27 }
  0x1f   :  { %101 = vrsqrt.f32 %v54_v30 }
  0x20   :  { %103 = vrsqrt.f32 %v47_v32 }
  0x21   :  { %105 = vrsqrt.f32 %v61_v33 }
  0x2b   :  { %v100_v34 = vpop.eup %99 }
  0x2c   :  { %v102_v35 = vpop.eup %101 }
  0x2d   :  { %v104_v36 = vpop.eup %103 }
  0x2e   :  { %v106_v37 = vpop.eup %105  ;;  %v70_v38 = vcombine.low %v100_v34, %v104_v36 }
  0x2f   :  { %v71_v39 = vcombine.low %v102_v35, %v106_v37 }
  0x30   :  { %v74_v40 = vmul.f32 %v70_v38, %v23_v0 }
  0x31   :  { %v75_v41 = vmul.f32 %v71_v39, %v24_v1 }
  0x32   :  { %76 = vst [vmem:[#allocation5] sm:$0xff] %v74_v40 }
  0x33   :  { %77 = vst [vmem:[#allocation5 + $0x8] sm:$0xff] %v75_v41 }
  0x34   :  { %138 = shalt.err (!%p135_p9)
}
  0x35   :  { %89 = dma.vmem_to_hbm [thread:$0]  %s84_s13, 256, %s178_s1, [#allocation4], %s152_s9, %s152_s9, %s153_s10  }
  0x36   :  { %149 = dma.done.wait [#allocation4], 256  }
  0x37   :  { %150 = vsyncadd [#allocation4], 4294967040 }
  0x38   :  { %93 = vsyncpa [#allocation3], 1 }
  0x39   :  { %94 = vsyncpa [#allocation4], 1 }

</bundles_post_ra>
